<compile_context>
chip_gen: v5e
topology: v5e:2x2
jax: 0.10.0
libtpu: 0.0.40
codegen_flags: <defaults>
</compile_context>

<pallas_src>
import functools

import jax
import jax.numpy as jnp
from jax import lax
from jax.experimental import pallas as pl
from jax.experimental.pallas import tpu as pltpu


def _largest_divisor_leq(n, cap, step=8):
    """Largest multiple-of-`step` divisor of n that is <= cap (falls back to n)."""
    t = (min(cap, n) // step) * step
    while t >= step:
        if n % t == 0:
            return t
        t -= step
    return n


# ---------------------------------------------------------------------------
# Fused embeddings kernel (grid = (B, S // tS))
# ---------------------------------------------------------------------------
def electra_embeddings_kernel(ids_ref,      # SMEM (scalar prefetch): (B, S) int32
                              word_hbm,     # ANY/HBM: (V, E) word-embedding table
                              pos_ref,      # VMEM: (tS, E) rows [s*tS, (s+1)*tS) of position table
                              ttab_ref,     # VMEM: (T, E) token-type table (tiny)
                              ttc_ref,      # VMEM: (1, tS, 1) int32 token_type_ids tile
                              gamma_ref,    # VMEM: (1, E) f32
                              beta_ref,     # VMEM: (1, E) f32
                              out_ref,      # VMEM: (1, tS, E) f32
                              wbuf,         # scratch VMEM: (2*tC, E) double-buffered word rows
                              sem,          # scratch: (2,) DMA semaphores (one per buffer slot)
                              *, eps, chunk):
    b = pl.program_id(0)
    s = pl.program_id(1)
    _, tS, E = out_ref.shape
    T = ttab_ref.shape[0]
    tC = chunk
    nc = tS // tC                       # number of gather chunks per tile (static)
    seq_base = s * tS                   # first sequence position of this tile
    unroll = min(8, tC)

    # ---- small (1, E) loads hoisted out of the chunk loop (f32 for v5e) ------
    gamma = gamma_ref[...].astype(jnp.float32)
    beta = beta_ref[...].astype(jnp.float32)
    if T == 2:
        tt_row0 = ttab_ref[pl.ds(0, 1), :].astype(jnp.float32)   # (1, E)
        tt_row1 = ttab_ref[pl.ds(1, 1), :].astype(jnp.float32)   # (1, E)

    # ---- manual row-gather machinery (shared sem per slot, compact loops) ----
    def issue_chunk(c, slot):
        """Start tC row-gather DMAs for chunk c of this tile into buffer `slot`."""
        def body(j, carry):
            tok = ids_ref[b, seq_base + c * tC + j]
            pltpu.make_async_copy(word_hbm.at[pl.ds(tok, 1)],
                                  wbuf.at[pl.ds(slot * tC + j, 1)],
                                  sem.at[slot]).start()
            return carry
        lax.fori_loop(0, tC, body, 0, unroll=unroll)

    def wait_chunk(slot):
        """Matched per-row waits on buffer `slot` (one semaphore per slot)."""
        def body(j, carry):
            pltpu.make_async_copy(word_hbm.at[pl.ds(0, 1)],
                                  wbuf.at[pl.ds(slot * tC + j, 1)],
                                  sem.at[slot]).wait()
            return carry
        lax.fori_loop(0, tC, body, 0, unroll=unroll)

    def compute_chunk(c, slot):
        rows = pl.ds(c * tC, tC)                                  # static slice in the tile
        w = wbuf[pl.ds(slot * tC, tC), :].astype(jnp.float32)     # (tC, E) gathered word rows
        pe = pos_ref[rows, :].astype(jnp.float32)                 # (tC, E)
        ttc = ttc_ref[0, rows, :]                                 # (tC, 1) int32
        if T == 2:
            # single compare + select (review: replace the T-iteration mask loop)
            te = jnp.where(ttc == 0, tt_row0, tt_row1)            # (tC, E)
        else:
            te = jnp.zeros((tC, E), jnp.float32)
            for t_idx in range(T):
                row = ttab_ref[pl.ds(t_idx, 1), :].astype(jnp.float32)
                te = te + (ttc == t_idx).astype(jnp.float32) * row
        x = w + pe + te
        # LayerNorm: reuse d = x - mean for variance and normalization
        mean = jnp.mean(x, axis=-1, keepdims=True)
        d = x - mean
        var = jnp.mean(d * d, axis=-1, keepdims=True)
        y = d * lax.rsqrt(var + eps)
        out_ref[0, rows, :] = y * gamma + beta                    # lane-dense store

    # ---- chunk-level double-buffered pipeline --------------------------------
    # Chunk c+1's gathers are issued before we wait/compute/store chunk c, so the
    # DMA latency is hidden behind the previous chunk's LayerNorm + store.
    issue_chunk(0, 0)
    for c in range(nc):                 # static Python loop, nc is small (<= tS/tC)
        slot = c & 1
        if c + 1 < nc:
            issue_chunk(c + 1, 1 - slot)
        wait_chunk(slot)
        compute_chunk(c, slot)


# ---------------------------------------------------------------------------
# Wrapper
# ---------------------------------------------------------------------------
def electra_embeddings(input_ids, token_type_ids, params, *,
                       seq_tile=256, gather_chunk=32, table_dtype=jnp.float32):
    B, S = input_ids.shape
    V, E = params["word_embeddings"].shape
    P = params["position_embeddings"].shape[0]
    T = params["token_type_embeddings"].shape[0]
    eps = params["layer_norm_eps"]

    assert S <= P, "sequence longer than max_position_embeddings"
    assert S % 8 == 0, "sequence length must be a multiple of 8 (pad upstream)"
    # NOTE: input_ids must lie in [0, V) — the row gather does not bounds-check.

    # S tile per grid step (bounds per-step VMEM, feeds both TensorCores on v7x)
    tS = _largest_divisor_leq(S, seq_tile)
    # rows gathered per DMA wave, double-buffered inside the kernel
    tC = _largest_divisor_leq(tS, gather_chunk)
    nS = S // tS

    word = params["word_embeddings"].astype(table_dtype)
    pos = params["position_embeddings"].astype(table_dtype)
    ttab = params["token_type_embeddings"].astype(table_dtype)

    grid_spec = pltpu.PrefetchScalarGridSpec(
        num_scalar_prefetch=1,                                       # input_ids -> SMEM
        grid=(B, nS),
        in_specs=[
            pl.BlockSpec(memory_space=pl.ANY),                       # word table stays in HBM
            pl.BlockSpec((tS, E), lambda b, s, ids: (s, 0)),         # position rows of tile s
            pl.BlockSpec((T, E), lambda b, s, ids: (0, 0)),          # full token-type table
            pl.BlockSpec((1, tS, 1), lambda b, s, ids: (b, s, 0)),   # token_type_ids tile
            pl.BlockSpec((1, E), lambda b, s, ids: (0, 0)),          # ln gamma
            pl.BlockSpec((1, E), lambda b, s, ids: (0, 0)),          # ln beta
        ],
        out_specs=pl.BlockSpec((1, tS, E), lambda b, s, ids: (b, s, 0)),
        scratch_shapes=[
            pltpu.VMEM((2 * tC, E), table_dtype),                    # double-buffered word rows
            pltpu.SemaphoreType.DMA((2,)),                           # one sem per buffer slot
        ],
    )

    return pl.pallas_call(
        functools.partial(electra_embeddings_kernel, eps=eps, chunk=tC),
        out_shape=jax.ShapeDtypeStruct((B, S, E), jnp.float32),
        grid_spec=grid_spec,
        compiler_params=pltpu.CompilerParams(
            dimension_semantics=("parallel", "parallel")),
    )(input_ids.astype(jnp.int32),
      word,
      pos,
      ttab,
      token_type_ids.reshape(B, S, 1).astype(jnp.int32),
      params["ln_gamma"],
      params["ln_beta"])


# ---------------------------------------------------------------------------
# Pure-JAX reference (for correctness check)
# ---------------------------------------------------------------------------
def electra_embeddings_ref(input_ids, token_type_ids, params):
    B, S = input_ids.shape
    we = params["word_embeddings"][input_ids]                       # (B, S, E)
    pe = params["position_embeddings"][jnp.arange(S)]               # (S, E)
    te = params["token_type_embeddings"][token_type_ids]            # (B, S, E)
    x = we + pe[None, :, :] + te
    mean = jnp.mean(x, axis=-1, keepdims=True)
    var = jnp.mean((x - mean) ** 2, axis=-1, keepdims=True)
    xn = (x - mean) / jnp.sqrt(var + params["layer_norm_eps"])
    return xn * params["ln_gamma"] + params["ln_beta"]


# ---------------------------------------------------------------------------
# Deterministic parameter init + demo
# ---------------------------------------------------------------------------
if __name__ == "__main__":
    B, S, E = 2, 8, 128          # batch, seq, embedding_size (E % 128 == 0: lane-dense)
    V, P, T = 128, 64, 2         # vocab_size, max_position_embeddings, type_vocab_size
    pad_token_id = 0

    key = jax.random.PRNGKey(0)
    k_ids, k_tt, k_w, k_p, k_t, k_beta = jax.random.split(key, 6)

    input_ids = jax.random.randint(k_ids, (B, S), 0, V, dtype=jnp.int32)
    token_type_ids = jax.random.randint(k_tt, (B, S), 0, T, dtype=jnp.int32)

    word = 0.02 * jax.random.normal(k_w, (V, E), jnp.float32)
    word = word.at[pad_token_id].set(0.0)     # nn.Embedding padding_idx row is zero

    params = {
        "word_embeddings": word,
        "position_embeddings": 0.02 * jax.random.normal(k_p, (P, E), jnp.float32),
        "token_type_embeddings": 0.02 * jax.random.normal(k_t, (T, E), jnp.float32),
        "ln_gamma": jnp.ones((1, E), jnp.float32),
        "ln_beta": 0.01 * jax.random.normal(k_beta, (1, E), jnp.float32),
        "layer_norm_eps": 1e-12,
    }

    out = electra_embeddings(input_ids, token_type_ids, params)
    out = jax.block_until_ready(out)

    ref = electra_embeddings_ref(input_ids, token_type_ids, params)
    assert out.shape == (B, S, E)
    assert jnp.allclose(out, ref, atol=1e-4, rtol=1e-4), "mismatch vs reference"

    print("KERNEL_OK")
</pallas_src>

<mosaic_0001>
module attributes {stable_mosaic.version = 11 : i64} {
  func.func @electra_embeddings_kernel(%arg0: i32, %arg1: i32, %arg2: memref<2x8xi32, #tpu.memory_space<smem>>, %arg3: memref<128x128xf32, #tpu.memory_space<any>>, %arg4: memref<8x128xf32, #tpu.memory_space<vmem>>, %arg5: memref<2x128xf32, #tpu.memory_space<vmem>>, %arg6: memref<1x8x1xi32, #tpu.memory_space<vmem>>, %arg7: memref<1x128xf32, #tpu.memory_space<vmem>>, %arg8: memref<1x128xf32, #tpu.memory_space<vmem>>, %arg9: memref<1x8x128xf32, #tpu.memory_space<vmem>>, %arg10: memref<16x128xf32, #tpu.memory_space<vmem>>, %arg11: memref<2x!tpu.dma_semaphore, #tpu.memory_space<semaphore_mem>>) attributes {dimension_semantics = [#tpu.dimension_semantics<parallel>, #tpu.dimension_semantics<parallel>], iteration_bounds = array<i64: 2, 1>, scalar_prefetch = 1 : i64, scratch_operands = 2 : i64, tpu.core_type = #tpu.core_type<tc>, window_params = [{}, {transform_indices = @transform_1, window_bounds = array<i64: 8, 128>}, {pipeline_mode = #tpu.pipeline_mode<synchronous>, transform_indices = @transform_2, window_bounds = array<i64: 2, 128>}, {transform_indices = @transform_3, window_bounds = array<i64: 1, 8, 1>}, {pipeline_mode = #tpu.pipeline_mode<synchronous>, transform_indices = @transform_4, window_bounds = array<i64: 1, 128>}, {pipeline_mode = #tpu.pipeline_mode<synchronous>, transform_indices = @transform_5, window_bounds = array<i64: 1, 128>}, {transform_indices = @transform_6, window_bounds = array<i64: 1, 8, 128>}]} {
    %c8_i32 = arith.constant 8 : i32
    %0 = arith.muli %arg1, %c8_i32 : i32
    %c0 = arith.constant 0 : index
    %c0_0 = arith.constant 0 : index
    %1 = vector.load %arg7[%c0, %c0_0] : memref<1x128xf32, #tpu.memory_space<vmem>>, vector<1x128xf32>
    %c0_1 = arith.constant 0 : index
    %c0_2 = arith.constant 0 : index
    %2 = vector.load %arg8[%c0_1, %c0_2] : memref<1x128xf32, #tpu.memory_space<vmem>>, vector<1x128xf32>
    %c0_3 = arith.constant 0 : index
    %c0_4 = arith.constant 0 : index
    %3 = vector.load %arg5[%c0_3, %c0_4] : memref<2x128xf32, #tpu.memory_space<vmem>>, vector<1x128xf32>
    %c1 = arith.constant 1 : index
    %c0_5 = arith.constant 0 : index
    %4 = vector.load %arg5[%c1, %c0_5] : memref<2x128xf32, #tpu.memory_space<vmem>>, vector<1x128xf32>
    %c0_i32 = arith.constant 0 : i32
    %c0_i32_6 = arith.constant 0 : i32
    %5 = arith.addi %0, %c0_i32_6 : i32
    %6 = arith.addi %5, %c0_i32 : i32
    %7 = arith.index_cast %arg0 : i32 to index
    %8 = arith.index_cast %6 : i32 to index
    %9 = memref.load %arg2[%7, %8] : memref<2x8xi32, #tpu.memory_space<smem>>
    %c0_i32_7 = arith.constant 0 : i32
    %10 = arith.addi %c0_i32_7, %c0_i32 : i32
    %c0_i32_8 = arith.constant 0 : i32
    %c0_i32_9 = arith.constant 0 : i32
    %11 = tpu.memref_slice %arg3[%9, %c0_i32_9] : memref<128x128xf32, #tpu.memory_space<any>> -> memref<1x128xf32, #tpu.memory_space<any>>
    %c0_i32_10 = arith.constant 0 : i32
    %12 = tpu.memref_slice %arg10[%10, %c0_i32_10] : memref<16x128xf32, #tpu.memory_space<vmem>> -> memref<1x128xf32, #tpu.memory_space<vmem>>
    %13 = tpu.memref_slice %arg11[%c0_i32_8] : memref<2x!tpu.dma_semaphore, #tpu.memory_space<semaphore_mem>> -> memref<1x!tpu.dma_semaphore, #tpu.memory_space<semaphore_mem>>
    %14 = tpu.memref_squeeze %13 : memref<1x!tpu.dma_semaphore, #tpu.memory_space<semaphore_mem>> -> memref<!tpu.dma_semaphore, #tpu.memory_space<semaphore_mem>>
    tpu.enqueue_dma source(%11 : memref<1x128xf32, #tpu.memory_space<any>>) target(%12 : memref<1x128xf32, #tpu.memory_space<vmem>>) target_semaphore(%14 : memref<!tpu.dma_semaphore, #tpu.memory_space<semaphore_mem>>)
    %c1_i32 = arith.constant 1 : i32
    %c0_i32_11 = arith.constant 0 : i32
    %15 = arith.addi %0, %c0_i32_11 : i32
    %16 = arith.addi %15, %c1_i32 : i32
    %17 = arith.index_cast %arg0 : i32 to index
    %18 = arith.index_cast %16 : i32 to index
    %19 = memref.load %arg2[%17, %18] : memref<2x8xi32, #tpu.memory_space<smem>>
    %c0_i32_12 = arith.constant 0 : i32
    %20 = arith.addi %c0_i32_12, %c1_i32 : i32
    %c0_i32_13 = arith.constant 0 : i32
    %c0_i32_14 = arith.constant 0 : i32
    %21 = tpu.memref_slice %arg3[%19, %c0_i32_14] : memref<128x128xf32, #tpu.memory_space<any>> -> memref<1x128xf32, #tpu.memory_space<any>>
    %c0_i32_15 = arith.constant 0 : i32
    %22 = tpu.memref_slice %arg10[%20, %c0_i32_15] : memref<16x128xf32, #tpu.memory_space<vmem>> -> memref<1x128xf32, #tpu.memory_space<vmem>>
    %23 = tpu.memref_slice %arg11[%c0_i32_13] : memref<2x!tpu.dma_semaphore, #tpu.memory_space<semaphore_mem>> -> memref<1x!tpu.dma_semaphore, #tpu.memory_space<semaphore_mem>>
    %24 = tpu.memref_squeeze %23 : memref<1x!tpu.dma_semaphore, #tpu.memory_space<semaphore_mem>> -> memref<!tpu.dma_semaphore, #tpu.memory_space<semaphore_mem>>
    tpu.enqueue_dma source(%21 : memref<1x128xf32, #tpu.memory_space<any>>) target(%22 : memref<1x128xf32, #tpu.memory_space<vmem>>) target_semaphore(%24 : memref<!tpu.dma_semaphore, #tpu.memory_space<semaphore_mem>>)
    %c2_i32 = arith.constant 2 : i32
    %c0_i32_16 = arith.constant 0 : i32
    %25 = arith.addi %0, %c0_i32_16 : i32
    %26 = arith.addi %25, %c2_i32 : i32
    %27 = arith.index_cast %arg0 : i32 to index
    %28 = arith.index_cast %26 : i32 to index
    %29 = memref.load %arg2[%27, %28] : memref<2x8xi32, #tpu.memory_space<smem>>
    %c0_i32_17 = arith.constant 0 : i32
    %30 = arith.addi %c0_i32_17, %c2_i32 : i32
    %c0_i32_18 = arith.constant 0 : i32
    %c0_i32_19 = arith.constant 0 : i32
    %31 = tpu.memref_slice %arg3[%29, %c0_i32_19] : memref<128x128xf32, #tpu.memory_space<any>> -> memref<1x128xf32, #tpu.memory_space<any>>
    %c0_i32_20 = arith.constant 0 : i32
    %32 = tpu.memref_slice %arg10[%30, %c0_i32_20] : memref<16x128xf32, #tpu.memory_space<vmem>> -> memref<1x128xf32, #tpu.memory_space<vmem>>
    %33 = tpu.memref_slice %arg11[%c0_i32_18] : memref<2x!tpu.dma_semaphore, #tpu.memory_space<semaphore_mem>> -> memref<1x!tpu.dma_semaphore, #tpu.memory_space<semaphore_mem>>
    %34 = tpu.memref_squeeze %33 : memref<1x!tpu.dma_semaphore, #tpu.memory_space<semaphore_mem>> -> memref<!tpu.dma_semaphore, #tpu.memory_space<semaphore_mem>>
    tpu.enqueue_dma source(%31 : memref<1x128xf32, #tpu.memory_space<any>>) target(%32 : memref<1x128xf32, #tpu.memory_space<vmem>>) target_semaphore(%34 : memref<!tpu.dma_semaphore, #tpu.memory_space<semaphore_mem>>)
    %c3_i32 = arith.constant 3 : i32
    %c0_i32_21 = arith.constant 0 : i32
    %35 = arith.addi %0, %c0_i32_21 : i32
    %36 = arith.addi %35, %c3_i32 : i32
    %37 = arith.index_cast %arg0 : i32 to index
    %38 = arith.index_cast %36 : i32 to index
    %39 = memref.load %arg2[%37, %38] : memref<2x8xi32, #tpu.memory_space<smem>>
    %c0_i32_22 = arith.constant 0 : i32
    %40 = arith.addi %c0_i32_22, %c3_i32 : i32
    %c0_i32_23 = arith.constant 0 : i32
    %c0_i32_24 = arith.constant 0 : i32
    %41 = tpu.memref_slice %arg3[%39, %c0_i32_24] : memref<128x128xf32, #tpu.memory_space<any>> -> memref<1x128xf32, #tpu.memory_space<any>>
    %c0_i32_25 = arith.constant 0 : i32
    %42 = tpu.memref_slice %arg10[%40, %c0_i32_25] : memref<16x128xf32, #tpu.memory_space<vmem>> -> memref<1x128xf32, #tpu.memory_space<vmem>>
    %43 = tpu.memref_slice %arg11[%c0_i32_23] : memref<2x!tpu.dma_semaphore, #tpu.memory_space<semaphore_mem>> -> memref<1x!tpu.dma_semaphore, #tpu.memory_space<semaphore_mem>>
    %44 = tpu.memref_squeeze %43 : memref<1x!tpu.dma_semaphore, #tpu.memory_space<semaphore_mem>> -> memref<!tpu.dma_semaphore, #tpu.memory_space<semaphore_mem>>
    tpu.enqueue_dma source(%41 : memref<1x128xf32, #tpu.memory_space<any>>) target(%42 : memref<1x128xf32, #tpu.memory_space<vmem>>) target_semaphore(%44 : memref<!tpu.dma_semaphore, #tpu.memory_space<semaphore_mem>>)
    %c4_i32 = arith.constant 4 : i32
    %c0_i32_26 = arith.constant 0 : i32
    %45 = arith.addi %0, %c0_i32_26 : i32
    %46 = arith.addi %45, %c4_i32 : i32
    %47 = arith.index_cast %arg0 : i32 to index
    %48 = arith.index_cast %46 : i32 to index
    %49 = memref.load %arg2[%47, %48] : memref<2x8xi32, #tpu.memory_space<smem>>
    %c0_i32_27 = arith.constant 0 : i32
    %50 = arith.addi %c0_i32_27, %c4_i32 : i32
    %c0_i32_28 = arith.constant 0 : i32
    %c0_i32_29 = arith.constant 0 : i32
    %51 = tpu.memref_slice %arg3[%49, %c0_i32_29] : memref<128x128xf32, #tpu.memory_space<any>> -> memref<1x128xf32, #tpu.memory_space<any>>
    %c0_i32_30 = arith.constant 0 : i32
    %52 = tpu.memref_slice %arg10[%50, %c0_i32_30] : memref<16x128xf32, #tpu.memory_space<vmem>> -> memref<1x128xf32, #tpu.memory_space<vmem>>
    %53 = tpu.memref_slice %arg11[%c0_i32_28] : memref<2x!tpu.dma_semaphore, #tpu.memory_space<semaphore_mem>> -> memref<1x!tpu.dma_semaphore, #tpu.memory_space<semaphore_mem>>
    %54 = tpu.memref_squeeze %53 : memref<1x!tpu.dma_semaphore, #tpu.memory_space<semaphore_mem>> -> memref<!tpu.dma_semaphore, #tpu.memory_space<semaphore_mem>>
    tpu.enqueue_dma source(%51 : memref<1x128xf32, #tpu.memory_space<any>>) target(%52 : memref<1x128xf32, #tpu.memory_space<vmem>>) target_semaphore(%54 : memref<!tpu.dma_semaphore, #tpu.memory_space<semaphore_mem>>)
    %c5_i32 = arith.constant 5 : i32
    %c0_i32_31 = arith.constant 0 : i32
    %55 = arith.addi %0, %c0_i32_31 : i32
    %56 = arith.addi %55, %c5_i32 : i32
    %57 = arith.index_cast %arg0 : i32 to index
    %58 = arith.index_cast %56 : i32 to index
    %59 = memref.load %arg2[%57, %58] : memref<2x8xi32, #tpu.memory_space<smem>>
    %c0_i32_32 = arith.constant 0 : i32
    %60 = arith.addi %c0_i32_32, %c5_i32 : i32
    %c0_i32_33 = arith.constant 0 : i32
    %c0_i32_34 = arith.constant 0 : i32
    %61 = tpu.memref_slice %arg3[%59, %c0_i32_34] : memref<128x128xf32, #tpu.memory_space<any>> -> memref<1x128xf32, #tpu.memory_space<any>>
    %c0_i32_35 = arith.constant 0 : i32
    %62 = tpu.memref_slice %arg10[%60, %c0_i32_35] : memref<16x128xf32, #tpu.memory_space<vmem>> -> memref<1x128xf32, #tpu.memory_space<vmem>>
    %63 = tpu.memref_slice %arg11[%c0_i32_33] : memref<2x!tpu.dma_semaphore, #tpu.memory_space<semaphore_mem>> -> memref<1x!tpu.dma_semaphore, #tpu.memory_space<semaphore_mem>>
    %64 = tpu.memref_squeeze %63 : memref<1x!tpu.dma_semaphore, #tpu.memory_space<semaphore_mem>> -> memref<!tpu.dma_semaphore, #tpu.memory_space<semaphore_mem>>
    tpu.enqueue_dma source(%61 : memref<1x128xf32, #tpu.memory_space<any>>) target(%62 : memref<1x128xf32, #tpu.memory_space<vmem>>) target_semaphore(%64 : memref<!tpu.dma_semaphore, #tpu.memory_space<semaphore_mem>>)
    %c6_i32 = arith.constant 6 : i32
    %c0_i32_36 = arith.constant 0 : i32
    %65 = arith.addi %0, %c0_i32_36 : i32
    %66 = arith.addi %65, %c6_i32 : i32
    %67 = arith.index_cast %arg0 : i32 to index
    %68 = arith.index_cast %66 : i32 to index
    %69 = memref.load %arg2[%67, %68] : memref<2x8xi32, #tpu.memory_space<smem>>
    %c0_i32_37 = arith.constant 0 : i32
    %70 = arith.addi %c0_i32_37, %c6_i32 : i32
    %c0_i32_38 = arith.constant 0 : i32
    %c0_i32_39 = arith.constant 0 : i32
    %71 = tpu.memref_slice %arg3[%69, %c0_i32_39] : memref<128x128xf32, #tpu.memory_space<any>> -> memref<1x128xf32, #tpu.memory_space<any>>
    %c0_i32_40 = arith.constant 0 : i32
    %72 = tpu.memref_slice %arg10[%70, %c0_i32_40] : memref<16x128xf32, #tpu.memory_space<vmem>> -> memref<1x128xf32, #tpu.memory_space<vmem>>
    %73 = tpu.memref_slice %arg11[%c0_i32_38] : memref<2x!tpu.dma_semaphore, #tpu.memory_space<semaphore_mem>> -> memref<1x!tpu.dma_semaphore, #tpu.memory_space<semaphore_mem>>
    %74 = tpu.memref_squeeze %73 : memref<1x!tpu.dma_semaphore, #tpu.memory_space<semaphore_mem>> -> memref<!tpu.dma_semaphore, #tpu.memory_space<semaphore_mem>>
    tpu.enqueue_dma source(%71 : memref<1x128xf32, #tpu.memory_space<any>>) target(%72 : memref<1x128xf32, #tpu.memory_space<vmem>>) target_semaphore(%74 : memref<!tpu.dma_semaphore, #tpu.memory_space<semaphore_mem>>)
    %c7_i32 = arith.constant 7 : i32
    %c0_i32_41 = arith.constant 0 : i32
    %75 = arith.addi %0, %c0_i32_41 : i32
    %76 = arith.addi %75, %c7_i32 : i32
    %77 = arith.index_cast %arg0 : i32 to index
    %78 = arith.index_cast %76 : i32 to index
    %79 = memref.load %arg2[%77, %78] : memref<2x8xi32, #tpu.memory_space<smem>>
    %c0_i32_42 = arith.constant 0 : i32
    %80 = arith.addi %c0_i32_42, %c7_i32 : i32
    %c0_i32_43 = arith.constant 0 : i32
    %c0_i32_44 = arith.constant 0 : i32
    %81 = tpu.memref_slice %arg3[%79, %c0_i32_44] : memref<128x128xf32, #tpu.memory_space<any>> -> memref<1x128xf32, #tpu.memory_space<any>>
    %c0_i32_45 = arith.constant 0 : i32
    %82 = tpu.memref_slice %arg10[%80, %c0_i32_45] : memref<16x128xf32, #tpu.memory_space<vmem>> -> memref<1x128xf32, #tpu.memory_space<vmem>>
    %83 = tpu.memref_slice %arg11[%c0_i32_43] : memref<2x!tpu.dma_semaphore, #tpu.memory_space<semaphore_mem>> -> memref<1x!tpu.dma_semaphore, #tpu.memory_space<semaphore_mem>>
    %84 = tpu.memref_squeeze %83 : memref<1x!tpu.dma_semaphore, #tpu.memory_space<semaphore_mem>> -> memref<!tpu.dma_semaphore, #tpu.memory_space<semaphore_mem>>
    tpu.enqueue_dma source(%81 : memref<1x128xf32, #tpu.memory_space<any>>) target(%82 : memref<1x128xf32, #tpu.memory_space<vmem>>) target_semaphore(%84 : memref<!tpu.dma_semaphore, #tpu.memory_space<semaphore_mem>>)
    %c8_i32_46 = arith.constant 8 : i32
    %c0_i32_47 = arith.constant 0 : i32
    %c0_i32_48 = arith.constant 0 : i32
    %85 = arith.addi %c0_i32_48, %c0_i32_47 : i32
    %c0_i32_49 = arith.constant 0 : i32
    %c0_i32_50 = arith.constant 0 : i32
    %c0_i32_51 = arith.constant 0 : i32
    %86 = tpu.memref_slice %arg3[%c0_i32_50, %c0_i32_51] : memref<128x128xf32, #tpu.memory_space<any>> -> memref<1x128xf32, #tpu.memory_space<any>>
    %c0_i32_52 = arith.constant 0 : i32
    %87 = tpu.memref_slice %arg10[%85, %c0_i32_52] : memref<16x128xf32, #tpu.memory_space<vmem>> -> memref<1x128xf32, #tpu.memory_space<vmem>>
    %88 = tpu.memref_slice %arg11[%c0_i32_49] : memref<2x!tpu.dma_semaphore, #tpu.memory_space<semaphore_mem>> -> memref<1x!tpu.dma_semaphore, #tpu.memory_space<semaphore_mem>>
    %89 = tpu.memref_squeeze %88 : memref<1x!tpu.dma_semaphore, #tpu.memory_space<semaphore_mem>> -> memref<!tpu.dma_semaphore, #tpu.memory_space<semaphore_mem>>
    tpu.wait_dma2 semaphore(%89 : memref<!tpu.dma_semaphore, #tpu.memory_space<semaphore_mem>>) src(%86 : memref<1x128xf32, #tpu.memory_space<any>>) dst(%87 : memref<1x128xf32, #tpu.memory_space<vmem>>)
    %c1_i32_53 = arith.constant 1 : i32
    %c0_i32_54 = arith.constant 0 : i32
    %90 = arith.addi %c0_i32_54, %c1_i32_53 : i32
    %c0_i32_55 = arith.constant 0 : i32
    %c0_i32_56 = arith.constant 0 : i32
    %c0_i32_57 = arith.constant 0 : i32
    %91 = tpu.memref_slice %arg3[%c0_i32_56, %c0_i32_57] : memref<128x128xf32, #tpu.memory_space<any>> -> memref<1x128xf32, #tpu.memory_space<any>>
    %c0_i32_58 = arith.constant 0 : i32
    %92 = tpu.memref_slice %arg10[%90, %c0_i32_58] : memref<16x128xf32, #tpu.memory_space<vmem>> -> memref<1x128xf32, #tpu.memory_space<vmem>>
    %93 = tpu.memref_slice %arg11[%c0_i32_55] : memref<2x!tpu.dma_semaphore, #tpu.memory_space<semaphore_mem>> -> memref<1x!tpu.dma_semaphore, #tpu.memory_space<semaphore_mem>>
    %94 = tpu.memref_squeeze %93 : memref<1x!tpu.dma_semaphore, #tpu.memory_space<semaphore_mem>> -> memref<!tpu.dma_semaphore, #tpu.memory_space<semaphore_mem>>
    tpu.wait_dma2 semaphore(%94 : memref<!tpu.dma_semaphore, #tpu.memory_space<semaphore_mem>>) src(%91 : memref<1x128xf32, #tpu.memory_space<any>>) dst(%92 : memref<1x128xf32, #tpu.memory_space<vmem>>)
    %c2_i32_59 = arith.constant 2 : i32
    %c0_i32_60 = arith.constant 0 : i32
    %95 = arith.addi %c0_i32_60, %c2_i32_59 : i32
    %c0_i32_61 = arith.constant 0 : i32
    %c0_i32_62 = arith.constant 0 : i32
    %c0_i32_63 = arith.constant 0 : i32
    %96 = tpu.memref_slice %arg3[%c0_i32_62, %c0_i32_63] : memref<128x128xf32, #tpu.memory_space<any>> -> memref<1x128xf32, #tpu.memory_space<any>>
    %c0_i32_64 = arith.constant 0 : i32
    %97 = tpu.memref_slice %arg10[%95, %c0_i32_64] : memref<16x128xf32, #tpu.memory_space<vmem>> -> memref<1x128xf32, #tpu.memory_space<vmem>>
    %98 = tpu.memref_slice %arg11[%c0_i32_61] : memref<2x!tpu.dma_semaphore, #tpu.memory_space<semaphore_mem>> -> memref<1x!tpu.dma_semaphore, #tpu.memory_space<semaphore_mem>>
    %99 = tpu.memref_squeeze %98 : memref<1x!tpu.dma_semaphore, #tpu.memory_space<semaphore_mem>> -> memref<!tpu.dma_semaphore, #tpu.memory_space<semaphore_mem>>
    tpu.wait_dma2 semaphore(%99 : memref<!tpu.dma_semaphore, #tpu.memory_space<semaphore_mem>>) src(%96 : memref<1x128xf32, #tpu.memory_space<any>>) dst(%97 : memref<1x128xf32, #tpu.memory_space<vmem>>)
    %c3_i32_65 = arith.constant 3 : i32
    %c0_i32_66 = arith.constant 0 : i32
    %100 = arith.addi %c0_i32_66, %c3_i32_65 : i32
    %c0_i32_67 = arith.constant 0 : i32
    %c0_i32_68 = arith.constant 0 : i32
    %c0_i32_69 = arith.constant 0 : i32
    %101 = tpu.memref_slice %arg3[%c0_i32_68, %c0_i32_69] : memref<128x128xf32, #tpu.memory_space<any>> -> memref<1x128xf32, #tpu.memory_space<any>>
    %c0_i32_70 = arith.constant 0 : i32
    %102 = tpu.memref_slice %arg10[%100, %c0_i32_70] : memref<16x128xf32, #tpu.memory_space<vmem>> -> memref<1x128xf32, #tpu.memory_space<vmem>>
    %103 = tpu.memref_slice %arg11[%c0_i32_67] : memref<2x!tpu.dma_semaphore, #tpu.memory_space<semaphore_mem>> -> memref<1x!tpu.dma_semaphore, #tpu.memory_space<semaphore_mem>>
    %104 = tpu.memref_squeeze %103 : memref<1x!tpu.dma_semaphore, #tpu.memory_space<semaphore_mem>> -> memref<!tpu.dma_semaphore, #tpu.memory_space<semaphore_mem>>
    tpu.wait_dma2 semaphore(%104 : memref<!tpu.dma_semaphore, #tpu.memory_space<semaphore_mem>>) src(%101 : memref<1x128xf32, #tpu.memory_space<any>>) dst(%102 : memref<1x128xf32, #tpu.memory_space<vmem>>)
    %c4_i32_71 = arith.constant 4 : i32
    %c0_i32_72 = arith.constant 0 : i32
    %105 = arith.addi %c0_i32_72, %c4_i32_71 : i32
    %c0_i32_73 = arith.constant 0 : i32
    %c0_i32_74 = arith.constant 0 : i32
    %c0_i32_75 = arith.constant 0 : i32
    %106 = tpu.memref_slice %arg3[%c0_i32_74, %c0_i32_75] : memref<128x128xf32, #tpu.memory_space<any>> -> memref<1x128xf32, #tpu.memory_space<any>>
    %c0_i32_76 = arith.constant 0 : i32
    %107 = tpu.memref_slice %arg10[%105, %c0_i32_76] : memref<16x128xf32, #tpu.memory_space<vmem>> -> memref<1x128xf32, #tpu.memory_space<vmem>>
    %108 = tpu.memref_slice %arg11[%c0_i32_73] : memref<2x!tpu.dma_semaphore, #tpu.memory_space<semaphore_mem>> -> memref<1x!tpu.dma_semaphore, #tpu.memory_space<semaphore_mem>>
    %109 = tpu.memref_squeeze %108 : memref<1x!tpu.dma_semaphore, #tpu.memory_space<semaphore_mem>> -> memref<!tpu.dma_semaphore, #tpu.memory_space<semaphore_mem>>
    tpu.wait_dma2 semaphore(%109 : memref<!tpu.dma_semaphore, #tpu.memory_space<semaphore_mem>>) src(%106 : memref<1x128xf32, #tpu.memory_space<any>>) dst(%107 : memref<1x128xf32, #tpu.memory_space<vmem>>)
    %c5_i32_77 = arith.constant 5 : i32
    %c0_i32_78 = arith.constant 0 : i32
    %110 = arith.addi %c0_i32_78, %c5_i32_77 : i32
    %c0_i32_79 = arith.constant 0 : i32
    %c0_i32_80 = arith.constant 0 : i32
    %c0_i32_81 = arith.constant 0 : i32
    %111 = tpu.memref_slice %arg3[%c0_i32_80, %c0_i32_81] : memref<128x128xf32, #tpu.memory_space<any>> -> memref<1x128xf32, #tpu.memory_space<any>>
    %c0_i32_82 = arith.constant 0 : i32
    %112 = tpu.memref_slice %arg10[%110, %c0_i32_82] : memref<16x128xf32, #tpu.memory_space<vmem>> -> memref<1x128xf32, #tpu.memory_space<vmem>>
    %113 = tpu.memref_slice %arg11[%c0_i32_79] : memref<2x!tpu.dma_semaphore, #tpu.memory_space<semaphore_mem>> -> memref<1x!tpu.dma_semaphore, #tpu.memory_space<semaphore_mem>>
    %114 = tpu.memref_squeeze %113 : memref<1x!tpu.dma_semaphore, #tpu.memory_space<semaphore_mem>> -> memref<!tpu.dma_semaphore, #tpu.memory_space<semaphore_mem>>
    tpu.wait_dma2 semaphore(%114 : memref<!tpu.dma_semaphore, #tpu.memory_space<semaphore_mem>>) src(%111 : memref<1x128xf32, #tpu.memory_space<any>>) dst(%112 : memref<1x128xf32, #tpu.memory_space<vmem>>)
    %c6_i32_83 = arith.constant 6 : i32
    %c0_i32_84 = arith.constant 0 : i32
    %115 = arith.addi %c0_i32_84, %c6_i32_83 : i32
    %c0_i32_85 = arith.constant 0 : i32
    %c0_i32_86 = arith.constant 0 : i32
    %c0_i32_87 = arith.constant 0 : i32
    %116 = tpu.memref_slice %arg3[%c0_i32_86, %c0_i32_87] : memref<128x128xf32, #tpu.memory_space<any>> -> memref<1x128xf32, #tpu.memory_space<any>>
    %c0_i32_88 = arith.constant 0 : i32
    %117 = tpu.memref_slice %arg10[%115, %c0_i32_88] : memref<16x128xf32, #tpu.memory_space<vmem>> -> memref<1x128xf32, #tpu.memory_space<vmem>>
    %118 = tpu.memref_slice %arg11[%c0_i32_85] : memref<2x!tpu.dma_semaphore, #tpu.memory_space<semaphore_mem>> -> memref<1x!tpu.dma_semaphore, #tpu.memory_space<semaphore_mem>>
    %119 = tpu.memref_squeeze %118 : memref<1x!tpu.dma_semaphore, #tpu.memory_space<semaphore_mem>> -> memref<!tpu.dma_semaphore, #tpu.memory_space<semaphore_mem>>
    tpu.wait_dma2 semaphore(%119 : memref<!tpu.dma_semaphore, #tpu.memory_space<semaphore_mem>>) src(%116 : memref<1x128xf32, #tpu.memory_space<any>>) dst(%117 : memref<1x128xf32, #tpu.memory_space<vmem>>)
    %c7_i32_89 = arith.constant 7 : i32
    %c0_i32_90 = arith.constant 0 : i32
    %120 = arith.addi %c0_i32_90, %c7_i32_89 : i32
    %c0_i32_91 = arith.constant 0 : i32
    %c0_i32_92 = arith.constant 0 : i32
    %c0_i32_93 = arith.constant 0 : i32
    %121 = tpu.memref_slice %arg3[%c0_i32_92, %c0_i32_93] : memref<128x128xf32, #tpu.memory_space<any>> -> memref<1x128xf32, #tpu.memory_space<any>>
    %c0_i32_94 = arith.constant 0 : i32
    %122 = tpu.memref_slice %arg10[%120, %c0_i32_94] : memref<16x128xf32, #tpu.memory_space<vmem>> -> memref<1x128xf32, #tpu.memory_space<vmem>>
    %123 = tpu.memref_slice %arg11[%c0_i32_91] : memref<2x!tpu.dma_semaphore, #tpu.memory_space<semaphore_mem>> -> memref<1x!tpu.dma_semaphore, #tpu.memory_space<semaphore_mem>>
    %124 = tpu.memref_squeeze %123 : memref<1x!tpu.dma_semaphore, #tpu.memory_space<semaphore_mem>> -> memref<!tpu.dma_semaphore, #tpu.memory_space<semaphore_mem>>
    tpu.wait_dma2 semaphore(%124 : memref<!tpu.dma_semaphore, #tpu.memory_space<semaphore_mem>>) src(%121 : memref<1x128xf32, #tpu.memory_space<any>>) dst(%122 : memref<1x128xf32, #tpu.memory_space<vmem>>)
    %c8_i32_95 = arith.constant 8 : i32
    %c0_96 = arith.constant 0 : index
    %c0_97 = arith.constant 0 : index
    %125 = vector.load %arg10[%c0_96, %c0_97] : memref<16x128xf32, #tpu.memory_space<vmem>>, vector<8x128xf32>
    %c0_98 = arith.constant 0 : index
    %c0_99 = arith.constant 0 : index
    %126 = vector.load %arg4[%c0_98, %c0_99] : memref<8x128xf32, #tpu.memory_space<vmem>>, vector<8x128xf32>
    %c0_100 = arith.constant 0 : index
    %c0_101 = arith.constant 0 : index
    %c0_102 = arith.constant 0 : index
    %127 = vector.load %arg6[%c0_100, %c0_101, %c0_102] : memref<1x8x1xi32, #tpu.memory_space<vmem>>, vector<1x8x1xi32>
    %128 = vector.shape_cast %127 : vector<1x8x1xi32> to vector<8x1xi32>
    %c0_i32_103 = arith.constant 0 : i32
    %129 = vector.broadcast %c0_i32_103 : i32 to vector<8x1xi32>
    %130 = arith.cmpi eq, %128, %129 : vector<8x1xi32>
    %131 = vector.shape_cast %130 : vector<8x1xi1> to vector<8x1xi1>
    %132 = vector.broadcast %131 : vector<8x1xi1> to vector<8x128xi1>
    %133 = vector.shape_cast %3 : vector<1x128xf32> to vector<1x128xf32>
    %134 = vector.broadcast %133 : vector<1x128xf32> to vector<8x128xf32>
    %135 = vector.shape_cast %4 : vector<1x128xf32> to vector<1x128xf32>
    %136 = vector.broadcast %135 : vector<1x128xf32> to vector<8x128xf32>
    %137 = arith.select %132, %134, %136 : vector<8x128xi1>, vector<8x128xf32>
    %138 = arith.addf %125, %126 : vector<8x128xf32>
    %139 = arith.addf %138, %137 : vector<8x128xf32>
    %cst = arith.constant dense<0.000000e+00> : vector<8xf32>
    %140 = vector.multi_reduction <add>, %139, %cst [1] : vector<8x128xf32> to vector<8xf32>
    %141 = vector.shape_cast %140 : vector<8xf32> to vector<8x1xf32>
    %cst_104 = arith.constant 1.280000e+02 : f32
    %142 = vector.broadcast %cst_104 : f32 to vector<8x1xf32>
    %143 = arith.divf %141, %142 : vector<8x1xf32>
    %144 = vector.broadcast %143 : vector<8x1xf32> to vector<8x128xf32>
    %145 = arith.subf %139, %144 : vector<8x128xf32>
    %146 = arith.mulf %145, %145 : vector<8x128xf32>
    %cst_105 = arith.constant dense<0.000000e+00> : vector<8xf32>
    %147 = vector.multi_reduction <add>, %146, %cst_105 [1] : vector<8x128xf32> to vector<8xf32>
    %148 = vector.shape_cast %147 : vector<8xf32> to vector<8x1xf32>
    %cst_106 = arith.constant 1.280000e+02 : f32
    %149 = vector.broadcast %cst_106 : f32 to vector<8x1xf32>
    %150 = arith.divf %148, %149 : vector<8x1xf32>
    %cst_107 = arith.constant 9.99999996E-13 : f32
    %151 = vector.broadcast %cst_107 : f32 to vector<8x1xf32>
    %152 = arith.addf %150, %151 : vector<8x1xf32>
    %153 = math.rsqrt %152 : vector<8x1xf32>
    %154 = vector.broadcast %153 : vector<8x1xf32> to vector<8x128xf32>
    %155 = arith.mulf %145, %154 : vector<8x128xf32>
    %156 = vector.broadcast %1 : vector<1x128xf32> to vector<8x128xf32>
    %157 = arith.mulf %155, %156 : vector<8x128xf32>
    %158 = vector.broadcast %2 : vector<1x128xf32> to vector<8x128xf32>
    %159 = arith.addf %157, %158 : vector<8x128xf32>
    %c0_108 = arith.constant 0 : index
    %c0_109 = arith.constant 0 : index
    %c0_110 = arith.constant 0 : index
    %160 = vector.load %arg9[%c0_108, %c0_109, %c0_110] : memref<1x8x128xf32, #tpu.memory_space<vmem>>, vector<1x8x128xf32>
    %161 = vector.shape_cast %160 : vector<1x8x128xf32> to vector<8x128xf32>
    %162 = vector.shape_cast %159 : vector<8x128xf32> to vector<1x8x128xf32>
    tpu.vector_store %arg9[%c0_108, %c0_109, %c0_110], %162 {strides = array<i32>} : memref<1x8x128xf32, #tpu.memory_space<vmem>>, vector<1x8x128xf32>,
    return
  }
  func.func @transform_1(%arg0: i32, %arg1: i32, %arg2: memref<2x8xi32, #tpu.memory_space<smem>>) -> (i32, i32) {
    %c0_i32 = arith.constant 0 : i32
    %c0_i32_0 = arith.constant 0 : i32
    return %arg1, %c0_i32 : i32, i32
  }
  func.func @transform_2(%arg0: i32, %arg1: i32, %arg2: memref<2x8xi32, #tpu.memory_space<smem>>) -> (i32, i32) {
    %c0_i32 = arith.constant 0 : i32
    %c0_i32_0 = arith.constant 0 : i32
    %c0_i32_1 = arith.constant 0 : i32
    return %c0_i32, %c0_i32_0 : i32, i32
  }
  func.func @transform_3(%arg0: i32, %arg1: i32, %arg2: memref<2x8xi32, #tpu.memory_space<smem>>) -> (i32, i32, i32) {
    %c0_i32 = arith.constant 0 : i32
    %c0_i32_0 = arith.constant 0 : i32
    return %arg0, %arg1, %c0_i32 : i32, i32, i32
  }
  func.func @transform_4(%arg0: i32, %arg1: i32, %arg2: memref<2x8xi32, #tpu.memory_space<smem>>) -> (i32, i32) {
    %c0_i32 = arith.constant 0 : i32
    %c0_i32_0 = arith.constant 0 : i32
    %c0_i32_1 = arith.constant 0 : i32
    return %c0_i32, %c0_i32_0 : i32, i32
  }
  func.func @transform_5(%arg0: i32, %arg1: i32, %arg2: memref<2x8xi32, #tpu.memory_space<smem>>) -> (i32, i32) {
    %c0_i32 = arith.constant 0 : i32
    %c0_i32_0 = arith.constant 0 : i32
    %c0_i32_1 = arith.constant 0 : i32
    return %c0_i32, %c0_i32_0 : i32, i32
  }
  func.func @transform_6(%arg0: i32, %arg1: i32, %arg2: memref<2x8xi32, #tpu.memory_space<smem>>) -> (i32, i32, i32) {
    %c0_i32 = arith.constant 0 : i32
    %c0_i32_0 = arith.constant 0 : i32
    return %arg0, %arg1, %c0_i32 : i32, i32, i32
  }
}

</mosaic_0001>

<bundles_post_ra>
// kernel: tpu_custom_call.1
= control target key start
LH: loop header
LB: loop body
LE: loop exit
PB: predicated region body
PF: predicated region fallthrough
CT: control target
= control target key end

     0   :  { %s1089_s27 = smov [#allocation5]   ;;  %s1372_s0 = inlined_call_operand.vmem [shape: s32[2,8], index: 0, kind: input, shape index: {}]   ;;  %s1373_s1 = inlined_call_operand.hbm [shape: f32[128,128], index: 1, kind: input, shape index: {}]   ;;  %s1374_s2 = inlined_call_operand.hbm [shape: f32[64,128], index: 2, kind: input, shape index: {}]   ;;  %s1375_s3 = inlined_call_operand.vmem [shape: f32[2,128], index: 3, kind: input, shape index: {}]   ;;  %s1376_s4 = inlined_call_operand.vmem [shape: s32[2,8,1], index: 4, kind: input, shape index: {}]   ;;  %s1377_s5 = inlined_call_operand.vmem [shape: f32[1,128], index: 5, kind: input, shape index: {}]   ;;  %s1378_s6 = inlined_call_operand.vmem [shape: f32[1,128], index: 6, kind: input, shape index: {}]   ;;  %s1379_s7 = inlined_call_operand.hbm [shape: f32[2,8,128], index: 7, kind: output, shape index: {}]  }
   0x1   :  { %1383 = sst [smem:[#allocation34_spill]] %s1374_s2  ;;  %s13_s26 = sshll.u32 %s1372_s0, 4  ;;  %s14_s26 = int_to_ptr.vmem [resolvable:$true] %s13_s26 }
   0x2   :  { %1384 = sst [smem:[#allocation35_spill]] %s1375_s3 }
   0x3   :  { %1385 = sst [smem:[#allocation36_spill]] %s1376_s4 }
   0x4   :  { %1386 = sst [smem:[#allocation37_spill]] %s1377_s5 }
   0x5   :  { %16 = dma.vmem_to_smem %s14_s26, 32, %s1089_s27, [#allocation4] }
   0x6   :  { %1053 = dma.done.wait [#allocation4], 32 }
   0x7   :  { %1054 = vsyncadd [#allocation4], 4294967264 }
   0x8   :  { %19 = sfence }
   0x9   :  { %20 = vsyncpa [#allocation7], 0 }
   0xa   :  { %21 = vsyncpa [#allocation8], 0 }
   0xb   :  { %23 = vsyncpa [#allocation8 + $0x1], 0  ;;  %s1144_s28 = smov 0   ;;  %s1146_s29 = smov 0  }
   0xc   :  { %s1148_s30 = smov 0   ;;  %s1150_s8 = smov 0  }
   0xd   :  { %s1152_s9 = smov 0   ;;  %s1154_s0 = smov 0  }
   0xe LB: > { %1387 = sst [smem:[#allocation32_spill]] %s1083_s9  ;;  %s662_s10 = sadd.s32 4294967295, %s1087_s0   ;;  %s1087_s0 = sphi %s1154_s0, %s29_s0   ;;  %s1083_s9 = sphi %s1152_s9, %s1397_s9   ;;  %s1079_s8 = sphi %s1150_s8, %s1396_s8   ;;  %s1075_s30 = sphi %s1148_s30, %s1400_s30   ;;  %s1071_s29 = sphi %s1146_s29, %s1399_s29   ;;  %s1067_s28 = sphi %s1144_s28, %s1398_s28  }
   0xf   : > { %s663_s11 = sadd.s32 4294967294, %s1087_s0   ;;  %s41_s12 = sadd.s32 1, %s1083_s9 }
  0x10   : > { %s167_s13 = sadd.s32 1, %s1075_s30  ;;  %p43_p0 = scmp.ge.s32.totalorder %s41_s12, 2 }
  0x11   : > { %p177_p1 = scmp.ne.s32.totalorder %s1075_s30, %s1071_s29  ;;  %p178_p2 = scmp.eq.s32.totalorder %s662_s10, 1 }
  0x12   : > { %p183_p3 = scmp.ne.s32.totalorder %s1071_s29, %s1067_s28  ;;  %s1402_s12 = smov (%p43_p0, %s41_s12), 0 }
  0x13   : > { %1388 = sst [smem:[#allocation33_spill]] %s1402_s12  ;;  %p1184_p4 = por %p178_p2, %p177_p1 }
  0x14   : > { %p184_p5 = scmp.eq.s32.totalorder %s663_s11, 1  ;;  %s162_s15 = ssub.s32 %s1083_s9, %s1402_s12 }
  0x15   : > { %p664_p6 = scmp.ge.s32.totalorder %s1087_s0, 1  ;;  %p165_p7 = scmp.eq.s32.totalorder %s162_s15, 0 }
  0x16   : > { %p1191_p8 = por %p184_p5, %p183_p3  ;;  %p191_p9 = scmp.lt.s32.totalorder %s1087_s0, 3 }
  0x17   : > { %s1197_s17 = scalar_select %p165_p7, %s1075_s30, %s167_s13  }
  0x18   : > { %p192_p10 = pnand %p664_p6, %p191_p9  ;;  %p699_p11 = scmp.eq.s32.totalorder %s662_s10, 0 }
  0x19   : > { %s1391_s2 = sld [smem:[#allocation34_spill]]  ;;  %s1090_s21 = smov [#allocation6]  }
  0x1a   : > { %p691_p12 = pneg %p192_p10  ;;  %s207_s22 = sshll.u32 %s1090_s21, 4  ;;  %s208_s22 = int_to_ptr.vmem [resolvable:$true] %s207_s22 }
  0x1c   : > { %p692_p13 = pnand %p699_p11, %p691_p12  ;;  %239 = sbr.rel (%p192_p10) target bundleno = 536 (0x218), region = 40 }
  0x1f   : > { %s205_s20 = sshll.u32 %s1391_s2, 4  ;;  %s206_s20 = int_to_ptr.hbm [resolvable:$true] %s205_s20 }
  0x20   : > { %694 = dma.hbm_to_vmem [thread:$0]  (!%p692_p13), %s206_s20, 128, %s208_s22, [#allocation7]  }
  0x21   : > { %1056 = dma.done.wait (%p699_p11), [#allocation7], 128  }
  0x22   : > { %1058 = vsyncadd (%p699_p11), [#allocation7], 4294967168  ;;  %s1380_s23 = sand.u32 1, %s1071_s29   ;;  %p270_p0 = scmp.lt.s32.totalorder %s1079_s8, 1  ;;  %v1227_v1 = vld [vmem:[%s1378_s6] sm:$0x1] }
  0x23   : > { %s1206_s24 = sshll.u32 %s1380_s23, 3  ;;  %s1209_s25 = sshll.u32 %s1079_s8, 7 }
  0x24   : > { %s289_s26 = sld [smem:[#allocation5 + %s1209_s25]]  ;;  %s311_s10 = sadd.s32 1, %s1209_s25 }
  0x25   : > { %s271_s27 = scalar_select %p270_p0, %s1079_s8, 1 }
  0x26   : > { %s1091_s13 = smov [#allocation2]   ;;  %s1392_s4 = sld [smem:[#allocation36_spill]] }
  0x27   : > { %s670_s11 = sshll.u32 %s271_s27, 3  ;;  %s300_s15 = sshll.u32 %s1091_s13, 4  ;;  %s301_s15 = int_to_ptr.vmem [resolvable:$true] %s300_s15 }
  0x28   : > { %s1393_s5 = sld [smem:[#allocation37_spill]]  ;;  %s1092_s2 = smov [#allocation2 + $0x1]  }
  0x29   : > { %s1394_s3 = sld [smem:[#allocation35_spill]]  ;;  %s1242_s23 = sshll.u32 %s1092_s2, 4  ;;  %s325_s23 = int_to_ptr.vmem [resolvable:$true] %s1242_s23 }
  0x2a   : > { %s290_s19 = scalar_lea.hbm %s1373_s1, %s289_s26  ;;  %s312_s21 = sld [smem:[#allocation5 + %s311_s10]] }
  0x2b   : > { %s298_s22 = sshll.u32 %s290_s19, 4  ;;  %s1247_s27 = scalar_lea.hbm %s1373_s1, 128  ;;  %s299_s22 = int_to_ptr.hbm [resolvable:$true] %s298_s22 }
  0x2c   : > { %s1217_s20 = scalar_lea.vmem %s1392_s4, %s670_s11  ;;  %s809_s4 = sshra.s32 %s299_s22, 4  ;;  %s810_s4 = int_to_ptr.hbm [resolvable:$true] %s809_s4 }
  0x2d   : > { %s811_s9 = scalar_lea.hbm %s810_s4, 1  ;;  %p814_p2 = scmp.lt.s32.totalorder %s810_s4, %s1373_s1 }
  0x2e   : > { %v1222_v0 = vld [vmem:[%s1393_s5] sm:$0x1]  ;;  %p812_p1 = scmp.ne.s32.totalorder %s810_s4, %s811_s9  ;;  %p815_p3 = scmp.lt.s32.totalorder %s1247_s27, %s811_s9 }
  0x2f   : > { %v1232_v2 = vld [vmem:[%s1394_s3] sm:$0x1]  ;;  %v1237_v3 = vld [vmem:[%s1394_s3 + $0x1] sm:$0x1] }
  0x30   : > { %p816_p5 = por %p815_p3, %p814_p2 }
  0x32   : > { %p817_p6 = pnand %p816_p5, %p812_p1 }
  0x34   : > { %820 = shalt.err (!%p817_p6)  }
  0x35   : > { %303 = dma.hbm_to_vmem [thread:$0]  %s299_s22, 16, %s301_s15, [#allocation3] }
  0x36   : > { %s335_s26 = sadd.s32 2, %s1209_s25  ;;  %s313_s18 = scalar_lea.hbm %s1373_s1, %s312_s21 }
  0x37   : > { %s336_s10 = sld [smem:[#allocation5 + %s335_s26]]  ;;  %s322_s19 = sshll.u32 %s313_s18, 4  ;;  %s323_s19 = int_to_ptr.hbm [resolvable:$true] %s322_s19 }
  0x38   : > { %s1093_s3 = smov [#allocation2 + $0x2]   ;;  %s359_s4 = sadd.s32 3, %s1209_s25 }
  0x39   : > { %s1258_s2 = sshll.u32 %s1093_s3, 4  ;;  %s833_s9 = sshra.s32 %s323_s19, 4  ;;  %s834_s9 = int_to_ptr.hbm [resolvable:$true] %s833_s9  ;;  %s349_s2 = int_to_ptr.vmem [resolvable:$true] %s1258_s2 }
  0x3a   : > { %s835_s15 = scalar_lea.hbm %s834_s9, 1  ;;  %p838_p9 = scmp.lt.s32.totalorder %s834_s9, %s1373_s1 }
  0x3b   : > { %p836_p7 = scmp.ne.s32.totalorder %s834_s9, %s835_s15  ;;  %p839_p10 = scmp.lt.s32.totalorder %s1247_s27, %s835_s15 }
  0x3d   : > { %p840_p11 = por %p839_p10, %p838_p9 }
  0x3f   : > { %p841_p12 = pnand %p840_p11, %p836_p7 }
  0x41   : > { %844 = shalt.err (!%p841_p12)  }
  0x42   : > { %327 = dma.hbm_to_vmem [thread:$0]  %s323_s19, 16, %s325_s23, [#allocation3] }
  0x43   : > { %s360_s21 = sld [smem:[#allocation5 + %s359_s4]]  ;;  %s337_s11 = scalar_lea.hbm %s1373_s1, %s336_s10 }
  0x44   : > { %s346_s5 = sshll.u32 %s337_s11, 4  ;;  %s1094_s18 = smov [#allocation2 + $0x3]   ;;  %s347_s5 = int_to_ptr.hbm [resolvable:$true] %s346_s5 }
  0x45   : > { %s1269_s3 = sshll.u32 %s1094_s18, 4  ;;  %s383_s9 = sadd.s32 4, %s1209_s25  ;;  %s373_s3 = int_to_ptr.vmem [resolvable:$true] %s1269_s3 }
  0x46   : > { %s857_s15 = sshra.s32 %s347_s5, 4  ;;  %s858_s15 = int_to_ptr.hbm [resolvable:$true] %s857_s15 }
  0x47   : > { %s859_s22 = scalar_lea.hbm %s858_s15, 1  ;;  %p862_p0 = scmp.lt.s32.totalorder %s858_s15, %s1373_s1 }
  0x48   : > { %p860_p13 = scmp.ne.s32.totalorder %s858_s15, %s859_s22  ;;  %p863_p1 = scmp.lt.s32.totalorder %s1247_s27, %s859_s22 }
  0x4a   : > { %p864_p2 = por %p863_p1, %p862_p0 }
  0x4c   : > { %p865_p3 = pnand %p864_p2, %p860_p13 }
  0x4e   : > { %868 = shalt.err (!%p865_p3)  }
  0x4f   : > { %351 = dma.hbm_to_vmem [thread:$0]  %s347_s5, 16, %s349_s2, [#allocation3] }
  0x50   : > { %s384_s10 = sld [smem:[#allocation5 + %s383_s9]]  ;;  %s361_s13 = scalar_lea.hbm %s1373_s1, %s360_s21 }
  0x51   : > { %s370_s26 = sshll.u32 %s361_s13, 4  ;;  %s1095_s11 = smov [#allocation2 + $0x4]   ;;  %s371_s26 = int_to_ptr.hbm [resolvable:$true] %s370_s26 }
  0x52   : > { %s1280_s18 = sshll.u32 %s1095_s11, 4  ;;  %s407_s15 = sadd.s32 5, %s1209_s25  ;;  %s397_s18 = int_to_ptr.vmem [resolvable:$true] %s1280_s18 }
  0x53   : > { %s881_s22 = sshra.s32 %s371_s26, 4  ;;  %s882_s22 = int_to_ptr.hbm [resolvable:$true] %s881_s22 }
  0x54   : > { %s883_s23 = scalar_lea.hbm %s882_s22, 1  ;;  %p886_p6 = scmp.lt.s32.totalorder %s882_s22, %s1373_s1 }
  0x55   : > { %p884_p5 = scmp.ne.s32.totalorder %s882_s22, %s883_s23  ;;  %p887_p7 = scmp.lt.s32.totalorder %s1247_s27, %s883_s23 }
  0x57   : > { %p888_p9 = por %p887_p7, %p886_p6 }
  0x59   : > { %p889_p10 = pnand %p888_p9, %p884_p5 }
  0x5b   : > { %892 = shalt.err (!%p889_p10)  }
  0x5c   : > { %375 = dma.hbm_to_vmem [thread:$0]  %s371_s26, 16, %s373_s3, [#allocation3] }
  0x5d   : > { %s408_s21 = sld [smem:[#allocation5 + %s407_s15]]  ;;  %s385_s4 = scalar_lea.hbm %s1373_s1, %s384_s10 }
  0x5e   : > { %s394_s12 = sshll.u32 %s385_s4, 4  ;;  %s1096_s13 = smov [#allocation2 + $0x5]   ;;  %s395_s12 = int_to_ptr.hbm [resolvable:$true] %s394_s12 }
  0x5f   : > { %s1291_s11 = sshll.u32 %s1096_s13, 4  ;;  %s431_s22 = sadd.s32 6, %s1209_s25  ;;  %s421_s11 = int_to_ptr.vmem [resolvable:$true] %s1291_s11 }
  0x60   : > { %s905_s23 = sshra.s32 %s395_s12, 4  ;;  %s906_s23 = int_to_ptr.hbm [resolvable:$true] %s905_s23 }
  0x61   : > { %s907_s2 = scalar_lea.hbm %s906_s23, 1  ;;  %p910_p12 = scmp.lt.s32.totalorder %s906_s23, %s1373_s1 }
  0x62   : > { %p908_p11 = scmp.ne.s32.totalorder %s906_s23, %s907_s2  ;;  %p911_p13 = scmp.lt.s32.totalorder %s1247_s27, %s907_s2 }
  0x64   : > { %p912_p0 = por %p911_p13, %p910_p12 }
  0x66   : > { %p913_p1 = pnand %p912_p0, %p908_p11 }
  0x68   : > { %916 = shalt.err (!%p913_p1)  }
  0x69   : > { %399 = dma.hbm_to_vmem [thread:$0]  %s395_s12, 16, %s397_s18, [#allocation3] }
  0x6a   : > { %s432_s10 = sld [smem:[#allocation5 + %s431_s22]]  ;;  %s409_s9 = scalar_lea.hbm %s1373_s1, %s408_s21 }
  0x6b   : > { %s418_s19 = sshll.u32 %s409_s9, 4  ;;  %s1097_s4 = smov [#allocation2 + $0x6]   ;;  %s419_s19 = int_to_ptr.hbm [resolvable:$true] %s418_s19 }
  0x6c   : > { %s1302_s13 = sshll.u32 %s1097_s4, 4  ;;  %s455_s23 = sadd.s32 7, %s1209_s25  ;;  %s445_s13 = int_to_ptr.vmem [resolvable:$true] %s1302_s13 }
  0x6d   : > { %s929_s2 = sshra.s32 %s419_s19, 4  ;;  %s930_s2 = int_to_ptr.hbm [resolvable:$true] %s929_s2 }
  0x6e   : > { %s931_s3 = scalar_lea.hbm %s930_s2, 1  ;;  %p934_p3 = scmp.lt.s32.totalorder %s930_s2, %s1373_s1 }
  0x6f   : > { %p932_p2 = scmp.ne.s32.totalorder %s930_s2, %s931_s3  ;;  %p935_p5 = scmp.lt.s32.totalorder %s1247_s27, %s931_s3 }
  0x71   : > { %p936_p6 = por %p935_p5, %p934_p3 }
  0x73   : > { %p937_p7 = pnand %p936_p6, %p932_p2 }
  0x75   : > { %940 = shalt.err (!%p937_p7)  }
  0x76   : > { %423 = dma.hbm_to_vmem [thread:$0]  %s419_s19, 16, %s421_s11, [#allocation3] }
  0x77   : > { %s456_s21 = sld [smem:[#allocation5 + %s455_s23]]  ;;  %s433_s25 = scalar_lea.hbm %s1373_s1, %s432_s10 }
  0x78   : > { %s442_s15 = sshll.u32 %s433_s25, 4  ;;  %s1098_s5 = smov [#allocation2 + $0x7]   ;;  %s443_s15 = int_to_ptr.hbm [resolvable:$true] %s442_s15 }
  0x79   : > { %s468_s9 = sshll.u32 %s1098_s5, 4  ;;  %s953_s4 = sshra.s32 %s443_s15, 4  ;;  %s954_s4 = int_to_ptr.hbm [resolvable:$true] %s953_s4  ;;  %s469_s9 = int_to_ptr.vmem [resolvable:$true] %s468_s9 }
  0x7a   : > { %s955_s2 = scalar_lea.hbm %s954_s4, 1  ;;  %p958_p10 = scmp.lt.s32.totalorder %s954_s4, %s1373_s1 }
  0x7b   : > { %p956_p9 = scmp.ne.s32.totalorder %s954_s4, %s955_s2  ;;  %p959_p11 = scmp.lt.s32.totalorder %s1247_s27, %s955_s2 }
  0x7d   : > { %p960_p12 = por %p959_p11, %p958_p10 }
  0x7f   : > { %p961_p13 = pnand %p960_p12, %p956_p9 }
  0x81   : > { %964 = shalt.err (!%p961_p13)  }
  0x82   : > { %447 = dma.hbm_to_vmem [thread:$0]  %s443_s15, 16, %s445_s13, [#allocation3] }
  0x83   : > { %s457_s19 = scalar_lea.hbm %s1373_s1, %s456_s21 }
  0x84   : > { %s466_s23 = sshll.u32 %s457_s19, 4  ;;  %s467_s23 = int_to_ptr.hbm [resolvable:$true] %s466_s23 }
  0x85   : > { %s977_s12 = sshra.s32 %s467_s23, 4  ;;  %s978_s12 = int_to_ptr.hbm [resolvable:$true] %s977_s12 }
  0x86   : > { %s979_s22 = scalar_lea.hbm %s978_s12, 1  ;;  %p982_p1 = scmp.lt.s32.totalorder %s978_s12, %s1373_s1 }
  0x87   : > { %p980_p0 = scmp.ne.s32.totalorder %s978_s12, %s979_s22  ;;  %p983_p2 = scmp.lt.s32.totalorder %s1247_s27, %s979_s22 }
  0x89   : > { %p984_p3 = por %p983_p2, %p982_p1 }
  0x8b   : > { %p985_p5 = pnand %p984_p3, %p980_p0 }
  0x8d   : > { %988 = shalt.err (!%p985_p5)  }
  0x8e   : > { %471 = dma.hbm_to_vmem [thread:$0]  %s467_s23, 16, %s469_s9, [#allocation3] }
  0x8f   : > { %s269_s13 = scalar_lea.vmem [#allocation9], %s1206_s24 }
  0x90   : > { %1059 = dma.done.wait [#allocation3], 128 }
  0x91   : > { %1060 = vsyncadd [#allocation3], 4294967168  ;;  %v1099_v4 = vmov 0   ;;  %v491_v5 = vld [vmem:[%s1217_s20] sm:$0xff]  ;;  %v490_v8 = vld [vmem:[#allocation6] sm:$0xff]  ;;  %v498_v9 = vperm.slane %v1232_v2, 0 }
  0x92   : > { %762 = vset.pattern.permute.xlu0 %v1099_v4  ;;  %vm492_vm0 = vcmp.eq.s32.totalorder %v491_v5, 0  ;;  %v489_v7 = vld [vmem:[#allocation2] sm:$0xff]  ;;  %v499_v10 = vperm.slane %v1237_v3, 0  ;;  %v1100_v15 = vmov 128.0   ;;  %s680_s20 = sshll.u32 %s1079_s8, 3  ;;  %v531_v35 = vperm.slane %v1222_v0, 0 }
  0x93   : > { %v493_v6 = vsel %vm492_vm0, 1, %v1099_v4  ;;  %v501_v11 = vadd.f32 %v490_v8, %v489_v7  ;;  %763 = vrcp.f32 %v1100_v15  ;;  %s551_s15 = scalar_lea.hbm %s1379_s7, %s680_s20  ;;  %v535_v38 = vperm.slane %v1227_v1, 0  ;;  %s553_s5 = sshll.u32 %s269_s13, 4  ;;  %s554_s5 = int_to_ptr.vmem [resolvable:$true] %s553_s5 }
  0x94   : > { %495 = vperm.xlu0 %762, %v493_v6   ;;  %s555_s9 = sshll.u32 %s551_s15, 4  ;;  %s1395_s8 = sand.u32 1, %s1071_s29   ;;  %s556_s9 = int_to_ptr.hbm [resolvable:$true] %s555_s9 }
  0x95   : > { %s540_s4 = scalar_lea.sflag [#allocation8], %s1395_s8  ;;  %s1015_s2 = sshra.s32 %s556_s9, 4  ;;  %s1016_s2 = int_to_ptr.hbm [resolvable:$true] %s1015_s2 }
  0x96   : > { %s1017_s3 = scalar_lea.hbm %s1016_s2, 8  ;;  %s1021_s10 = scalar_lea.hbm %s1379_s7, 16 }
  0x97   : > { %p1018_p6 = scmp.ne.s32.totalorder %s1016_s2, %s1017_s3  ;;  %p1022_p10 = scmp.lt.s32.totalorder %s1016_s2, %s1379_s7 }
  0x98   : > { %p1023_p11 = scmp.lt.s32.totalorder %s1021_s10, %s1017_s3 }
  0x99   : > { %v764_v16 = vpop.eup %763  ;;  %p1019_p7 = pnand %p1018_p6, %p1184_p4 }
  0x9a   : > { %v506_v17 = vmul.f32 128.0, %v764_v16  ;;  %vm510_vm2 = vweird.f32 %v764_v16  ;;  %p1024_p12 = por %p1023_p11, %p1022_p10 }
  0x9b   : > { %p1020_p9 = pneg %p1019_p7 }
  0x9c   : > { %v507_v18 = vsub.f32 1.0, %v506_v17 }
  0x9d   : > { %p1025_p13 = pnand %p1024_p12, %p1020_p9 }
  0x9e   : > { %v508_v19 = vmul.f32 %v764_v16, %v507_v18 }
  0xa0   : > { %v509_v20 = vadd.f32 %v764_v16, %v508_v19 }
  0xa2   : > { %v511_v21 = vsel %vm510_vm2, %v764_v16, %v509_v20 }
 0x106   : > { %v496_v12 = vpop.permute.xlu0 %495 }
 0x107   : > { %vm497_vm1 = vcmp.eq.s32.totalorder %v496_v12, 1 }
 0x108   : > { %v500_v13 = vsel %vm497_vm1, %v498_v9, %v499_v10 }
 0x109   : > { %v502_v14 = vadd.f32 %v501_v11, %v500_v13 }
 0x10b   : > { %503 = vadd.xlane.f32.xlu0 %v502_v14 }
 0x17e   : > { %v504_v22 = vpop.xlane.xlu0 %503 }
 0x17f   : > { %v512_v23 = vmul.f32 %v511_v21, %v504_v22 }
 0x181   : > { %v513_v24 = vsub.f32 %v502_v14, %v512_v23 }
 0x183   : > { %v514_v25 = vmul.f32 %v513_v24, %v513_v24 }
 0x185   : > { %515 = vadd.xlane.f32.xlu1 %v514_v25 }
 0x1f8   : > { %v516_v26 = vpop.xlane.xlu1 %515 }
 0x1f9   : > { %v517_v27 = vmul.f32 %v516_v26, %v511_v21 }
 0x1fb   : > { %v518_v28 = vadd.f32 1e-12, %v517_v27 }
 0x1fd   : > { %765 = vrsqrt.f32 %v518_v28  ;;  %vm525_vm4 = vweird.f32 %v518_v28 }
 0x203   : > { %v766_v29 = vpop.eup %765 }
 0x204   : > { %v520_v30 = vmul.f32 %v766_v29, %v518_v28  ;;  %vm526_vm3 = vweird.f32 %v766_v29 }
 0x205   : > { %vm527_vm5 = vmor %vm525_vm4, %vm526_vm3 }
 0x206   : > { %v521_v31 = vmul.f32 %v766_v29, %v520_v30 }
 0x208   : > { %v522_v32 = vmul.f32 0.5, %v521_v31 }
 0x20a   : > { %v523_v33 = vsub.f32 1.5, %v522_v32 }
 0x20c   : > { %v524_v34 = vmul.f32 %v766_v29, %v523_v33 }
 0x20e   : > { %v528_v36 = vsel %vm527_vm5, %v766_v29, %v524_v34 }
 0x20f   : > { %v529_v37 = vmul.f32 %v528_v36, %v513_v24 }
 0x211   : > { %v533_v39 = vmul.f32 %v531_v35, %v529_v37 }
 0x213   : > { %v537_v40 = vadd.f32 %v535_v38, %v533_v39 }
 0x215   : > { %538 = vst [vmem:[%s269_s13] sm:$0xff] %v537_v40 }
 0x216   : > { %1028 = shalt.err (!%p1025_p13)
}
 0x217   : > { %689 = dma.vmem_to_hbm [thread:$0]  (%p1184_p4), %s554_s5, 128, %s556_s9, %s540_s4  }
 0x218 PF: > { %p701_p0 = scmp.ge.s32.totalorder %s1087_s0, 2  ;;  %s567_s24 = sand.u32 1, %s1067_s28  }
 0x219   : > { %s568_s12 = scalar_lea.sflag [#allocation8], %s567_s24 }
 0x21a   : > { %p696_p1 = pnand %p701_p0, %p1191_p8 }
 0x21c   : > { %p697_p2 = pneg %p696_p1 }
 0x21e   : > { %1062 = dma.done.wait (%p697_p2), %s568_s12, 128  }
 0x21f   : > { %1064 = vsyncadd (%p697_p2), %s568_s12, 4294967168  ;;  %s29_s0 = sadd.s32 1, %s1087_s0   ;;  %s1396_s8 = sld [smem:[#allocation32_spill]] }
 0x220   : > { %p26_p3 = scmp.ge.s32.totalorder %s29_s0, 4   ;;  %s1397_s9 = sld [smem:[#allocation33_spill]] }
 0x221   : > { %s1398_s28 = smov %s1071_s29  ;;  %s1399_s29 = smov %s1075_s30 }
 0x222   : > { %s1400_s30 = smov %s1197_s17  ;;  %28 = sbr.rel (!%p26_p3) target bundleno = 14 (0xe), region = 129 }
 0x227   :  { %574 = vsyncpa [#allocation7], 1 }
 0x228   :  { %576 = vsyncpa [#allocation7 + $0x1], 1 }
 0x229   :  { %577 = vsyncpa [#allocation8], 1 }
 0x22a   :  { %579 = vsyncpa [#allocation8 + $0x1], 1 }
 0x22b   :  { %580 = vsyncmov [#allocation3] }
 0x22e   :  { %s581_s14 = vpop.sfrf %580 }
 0x22f   :  { %p683_p4 = scmp.ne.s32.totalorder %s581_s14, 0 }
 0x231   :  { %585 = shalt.err (%p683_p4)  }
 0x232   :  { %587 = vsyncmov [#allocation3 + $0x1] }
 0x235   :  { %s588_s16 = vpop.sfrf %587 }
 0x236   :  { %p684_p8 = scmp.ne.s32.totalorder %s588_s16, 0 }
 0x238   :  { %592 = shalt.err (%p684_p8)  }

</bundles_post_ra>
